<compile_context>
chip_gen: v7x
topology: tpu7x:2x2x1
jax: 0.10.0
libtpu: 0.0.40
codegen_flags: <defaults>
</compile_context>

<pallas_src>
import functools
import math

import jax
import jax.numpy as jnp
from jax.experimental import pallas as pl
from jax.experimental.pallas import tpu as pltpu


def _mha_kernel(x_ref, wq_ref, wk_ref, wv_ref, bq_ref, bk_ref, bv_ref,
                wo_ref, bo_ref, o_ref, *, num_heads, head_size):
    """Grid = (batch,). One invocation computes all heads for one batch row."""
    x = x_ref[0]                                                     # (N, D) bf16

    # Fused, lane-packed projections: (N, D) x (D, H*dh) on the MXU, f32 accum.
    # The softmax 1/sqrt(dh) scale is already folded into wq / bq.
    q = jnp.dot(x, wq_ref[...], preferred_element_type=jnp.float32) + bq_ref[...]
    k = jnp.dot(x, wk_ref[...], preferred_element_type=jnp.float32) + bk_ref[...]
    v = jnp.dot(x, wv_ref[...], preferred_element_type=jnp.float32) + bv_ref[...]

    qb = q.astype(jnp.bfloat16)
    kb = k.astype(jnp.bfloat16)
    vb = v.astype(jnp.bfloat16)

    # Per-head scaled-dot-product attention (static unroll over the small head
    # count; scores / softmax kept in f32).
    head_outs = []
    for h in range(num_heads):
        sl = slice(h * head_size, (h + 1) * head_size)
        q_h = qb[:, sl]                                              # (N, dh)
        k_h = kb[:, sl]                                              # (N, dh)
        v_h = vb[:, sl]                                              # (N, dh)

        # QK^T via dot_general contracting on dh (no explicit K transpose).
        s = jax.lax.dot_general(
            q_h, k_h, (((1,), (1,)), ((), ())),
            preferred_element_type=jnp.float32)                      # (N, N) f32
        s = s - jnp.max(s, axis=-1, keepdims=True)
        p = jnp.exp(s)
        p = p * pl.reciprocal(jnp.sum(p, axis=-1, keepdims=True), approx=True)

        head_outs.append(
            jnp.dot(p.astype(jnp.bfloat16), v_h,
                    preferred_element_type=jnp.float32))             # (N, dh) f32

    # Concat heads -> one lane-dense output projection (N, H*dh) x (H*dh, D).
    cat = jnp.concatenate(head_outs, axis=-1).astype(jnp.bfloat16)   # (N, H*dh)
    out = jnp.dot(cat, wo_ref[...], preferred_element_type=jnp.float32) + bo_ref[...]

    o_ref[0] = out.astype(o_ref.dtype)                               # single store


def multi_head_attention(x, wq, wk, wv, bq, bk, bv, wo, bo, *, num_heads):
    """x: (B, N, D) f32.
    wq/wk/wv: (D, H*dh) f32 packed projections (column block h == head h's weight.T).
    bq/bk/bv: (1, H*dh) f32 packed biases.
    wo: (H*dh, D) f32 == output_projection.weight.T ; bo: (1, D) f32.
    Returns attention_output: (B, N, D) f32.
    """
    B, N, D = x.shape
    Hd = wq.shape[1]
    dh = Hd // num_heads
    scale = 1.0 / math.sqrt(dh)

    # Fold softmax scale into the Q projection (free), cast MXU operands to bf16;
    # biases stay f32 (added to the f32 accumulators inside the kernel).
    x_b = x.astype(jnp.bfloat16)
    wq_b = (wq * scale).astype(jnp.bfloat16)
    bq_s = bq * scale
    wk_b = wk.astype(jnp.bfloat16)
    wv_b = wv.astype(jnp.bfloat16)
    wo_b = wo.astype(jnp.bfloat16)

    kernel = functools.partial(_mha_kernel, num_heads=num_heads, head_size=dh)
    const2 = lambda b: (0, 0)   # weights stay VMEM-resident across the grid

    return pl.pallas_call(
        kernel,
        out_shape=jax.ShapeDtypeStruct((B, N, D), jnp.float32),
        grid_spec=pltpu.PrefetchScalarGridSpec(
            num_scalar_prefetch=0,
            grid=(B,),
            in_specs=[
                pl.BlockSpec((1, N, D), lambda b: (b, 0, 0)),  # x
                pl.BlockSpec((D, Hd), const2),                 # wq (scale folded)
                pl.BlockSpec((D, Hd), const2),                 # wk
                pl.BlockSpec((D, Hd), const2),                 # wv
                pl.BlockSpec((1, Hd), const2),                 # bq (scale folded)
                pl.BlockSpec((1, Hd), const2),                 # bk
                pl.BlockSpec((1, Hd), const2),                 # bv
                pl.BlockSpec((Hd, D), const2),                 # wo
                pl.BlockSpec((1, D), const2),                  # bo
            ],
            out_specs=pl.BlockSpec((1, N, D), lambda b: (b, 0, 0)),
        ),
        compiler_params=pltpu.CompilerParams(
            dimension_semantics=("parallel",),
        ),
    )(x_b, wq_b, wk_b, wv_b, bq_s, bk, bv, wo_b, bo)


def _reference(x, wq, wk, wv, bq, bk, bv, wo, bo, *, num_heads):
    """Pure-JAX f32 reference matching the PyTorch forward (eval mode)."""
    Hd = wq.shape[1]
    dh = Hd // num_heads
    q = x @ wq + bq
    k = x @ wk + bk
    v = x @ wv + bv
    outs = []
    for h in range(num_heads):
        sl = slice(h * dh, (h + 1) * dh)
        s = jnp.einsum("bnd,bmd->bnm", q[..., sl], k[..., sl]) / math.sqrt(dh)
        p = jax.nn.softmax(s, axis=-1)
        outs.append(jnp.einsum("bnm,bmd->bnd", p, v[..., sl]))
    cat = jnp.concatenate(outs, axis=-1)                  # (B, N, H*dh)
    return cat @ wo + bo


if __name__ == "__main__":
    # Config mirrors the PyTorch module's __init__.
    hidden_size = 32
    num_heads = 4
    head_size = hidden_size // num_heads
    all_head = num_heads * head_size
    B, N = 2, 8

    key = jax.random.PRNGKey(0)
    keys = jax.random.split(key, 9)

    x = jax.random.normal(keys[0], (B, N, hidden_size), jnp.float32)
    # Packed per-head nn.Linear params (column block h == head h's weight.T / bias).
    wq = 0.1 * jax.random.normal(keys[1], (hidden_size, all_head), jnp.float32)
    wk = 0.1 * jax.random.normal(keys[2], (hidden_size, all_head), jnp.float32)
    wv = 0.1 * jax.random.normal(keys[3], (hidden_size, all_head), jnp.float32)
    bq = 0.1 * jax.random.normal(keys[4], (1, all_head), jnp.float32)
    bk = 0.1 * jax.random.normal(keys[5], (1, all_head), jnp.float32)
    bv = 0.1 * jax.random.normal(keys[6], (1, all_head), jnp.float32)
    wo = 0.1 * jax.random.normal(keys[7], (all_head, hidden_size), jnp.float32)  # weight.T
    bo = 0.1 * jax.random.normal(keys[8], (1, hidden_size), jnp.float32)

    out = multi_head_attention(x, wq, wk, wv, bq, bk, bv, wo, bo,
                               num_heads=num_heads)
    out = jax.block_until_ready(out)

    ref = _reference(x, wq, wk, wv, bq, bk, bv, wo, bo, num_heads=num_heads)
    assert out.shape == (B, N, hidden_size)
    # bf16 MXU operands + approx reciprocal -> relaxed tolerance vs f32 reference.
    assert jnp.allclose(out, ref, atol=3e-2, rtol=3e-2), "mismatch vs reference"

    print("KERNEL_OK")
</pallas_src>

<mosaic_0001>
module attributes {stable_mosaic.version = 11 : i64} {
  func.func @_mha_kernel(%arg0: i32, %arg1: memref<1x8x32xbf16, #tpu.memory_space<vmem>>, %arg2: memref<32x32xbf16, #tpu.memory_space<vmem>>, %arg3: memref<32x32xbf16, #tpu.memory_space<vmem>>, %arg4: memref<32x32xbf16, #tpu.memory_space<vmem>>, %arg5: memref<1x32xf32, #tpu.memory_space<vmem>>, %arg6: memref<1x32xf32, #tpu.memory_space<vmem>>, %arg7: memref<1x32xf32, #tpu.memory_space<vmem>>, %arg8: memref<32x32xbf16, #tpu.memory_space<vmem>>, %arg9: memref<1x32xf32, #tpu.memory_space<vmem>>, %arg10: memref<1x8x32xf32, #tpu.memory_space<vmem>>) attributes {dimension_semantics = [#tpu.dimension_semantics<parallel>], iteration_bounds = array<i64: 2>, scalar_prefetch = 0 : i64, scratch_operands = 0 : i64, tpu.core_type = #tpu.core_type<tc>, window_params = [{transform_indices = @transform_0, window_bounds = array<i64: 1, 8, 32>}, {pipeline_mode = #tpu.pipeline_mode<synchronous>, transform_indices = @transform_1, window_bounds = array<i64: 32, 32>}, {pipeline_mode = #tpu.pipeline_mode<synchronous>, transform_indices = @transform_2, window_bounds = array<i64: 32, 32>}, {pipeline_mode = #tpu.pipeline_mode<synchronous>, transform_indices = @transform_3, window_bounds = array<i64: 32, 32>}, {pipeline_mode = #tpu.pipeline_mode<synchronous>, transform_indices = @transform_4, window_bounds = array<i64: 1, 32>}, {pipeline_mode = #tpu.pipeline_mode<synchronous>, transform_indices = @transform_5, window_bounds = array<i64: 1, 32>}, {pipeline_mode = #tpu.pipeline_mode<synchronous>, transform_indices = @transform_6, window_bounds = array<i64: 1, 32>}, {pipeline_mode = #tpu.pipeline_mode<synchronous>, transform_indices = @transform_7, window_bounds = array<i64: 32, 32>}, {pipeline_mode = #tpu.pipeline_mode<synchronous>, transform_indices = @transform_8, window_bounds = array<i64: 1, 32>}, {transform_indices = @transform_9, window_bounds = array<i64: 1, 8, 32>}]} {
    %c0 = arith.constant 0 : index
    %c0_0 = arith.constant 0 : index
    %c0_1 = arith.constant 0 : index
    %0 = vector.load %arg1[%c0, %c0_0, %c0_1] : memref<1x8x32xbf16, #tpu.memory_space<vmem>>, vector<1x8x32xbf16>
    %1 = vector.shape_cast %0 : vector<1x8x32xbf16> to vector<8x32xbf16>
    %c0_2 = arith.constant 0 : index
    %c0_3 = arith.constant 0 : index
    %2 = vector.load %arg2[%c0_2, %c0_3] : memref<32x32xbf16, #tpu.memory_space<vmem>>, vector<32x32xbf16>
    %cst = arith.constant dense<0.000000e+00> : vector<8x32xf32>
    %3 = tpu.matmul %1, %2, %cst {dimension_numbers = #tpu.dot_dimension_numbers<[1], [0], [0], [1], [0, 0, 1, 1], [], []>} : vector<8x32xbf16>, vector<32x32xbf16>, vector<8x32xf32> -> vector<8x32xf32>
    %c0_4 = arith.constant 0 : index
    %c0_5 = arith.constant 0 : index
    %4 = vector.load %arg5[%c0_4, %c0_5] : memref<1x32xf32, #tpu.memory_space<vmem>>, vector<1x32xf32>
    %5 = vector.broadcast %4 : vector<1x32xf32> to vector<8x32xf32>
    %6 = arith.addf %3, %5 : vector<8x32xf32>
    %c0_6 = arith.constant 0 : index
    %c0_7 = arith.constant 0 : index
    %7 = vector.load %arg3[%c0_6, %c0_7] : memref<32x32xbf16, #tpu.memory_space<vmem>>, vector<32x32xbf16>
    %cst_8 = arith.constant dense<0.000000e+00> : vector<8x32xf32>
    %8 = tpu.matmul %1, %7, %cst_8 {dimension_numbers = #tpu.dot_dimension_numbers<[1], [0], [0], [1], [0, 0, 1, 1], [], []>} : vector<8x32xbf16>, vector<32x32xbf16>, vector<8x32xf32> -> vector<8x32xf32>
    %c0_9 = arith.constant 0 : index
    %c0_10 = arith.constant 0 : index
    %9 = vector.load %arg6[%c0_9, %c0_10] : memref<1x32xf32, #tpu.memory_space<vmem>>, vector<1x32xf32>
    %10 = vector.broadcast %9 : vector<1x32xf32> to vector<8x32xf32>
    %11 = arith.addf %8, %10 : vector<8x32xf32>
    %c0_11 = arith.constant 0 : index
    %c0_12 = arith.constant 0 : index
    %12 = vector.load %arg4[%c0_11, %c0_12] : memref<32x32xbf16, #tpu.memory_space<vmem>>, vector<32x32xbf16>
    %cst_13 = arith.constant dense<0.000000e+00> : vector<8x32xf32>
    %13 = tpu.matmul %1, %12, %cst_13 {dimension_numbers = #tpu.dot_dimension_numbers<[1], [0], [0], [1], [0, 0, 1, 1], [], []>} : vector<8x32xbf16>, vector<32x32xbf16>, vector<8x32xf32> -> vector<8x32xf32>
    %c0_14 = arith.constant 0 : index
    %c0_15 = arith.constant 0 : index
    %14 = vector.load %arg7[%c0_14, %c0_15] : memref<1x32xf32, #tpu.memory_space<vmem>>, vector<1x32xf32>
    %15 = vector.broadcast %14 : vector<1x32xf32> to vector<8x32xf32>
    %16 = arith.addf %13, %15 : vector<8x32xf32>
    %17 = arith.truncf %6 : vector<8x32xf32> to vector<8x32xbf16>
    %18 = arith.truncf %11 : vector<8x32xf32> to vector<8x32xbf16>
    %19 = arith.truncf %16 : vector<8x32xf32> to vector<8x32xbf16>
    %20 = vector.extract_strided_slice %17 {offsets = [0, 0], sizes = [8, 8], strides = [1, 1]} : vector<8x32xbf16> to vector<8x8xbf16>
    %21 = vector.extract_strided_slice %18 {offsets = [0, 0], sizes = [8, 8], strides = [1, 1]} : vector<8x32xbf16> to vector<8x8xbf16>
    %22 = vector.extract_strided_slice %19 {offsets = [0, 0], sizes = [8, 8], strides = [1, 1]} : vector<8x32xbf16> to vector<8x8xbf16>
    %cst_16 = arith.constant dense<0.000000e+00> : vector<8x8xf32>
    %23 = tpu.matmul %20, %21, %cst_16 {dimension_numbers = #tpu.dot_dimension_numbers<[1], [1], [0], [0], [0, 0, 1, 0], [], []>} : vector<8x8xbf16>, vector<8x8xbf16>, vector<8x8xf32> -> vector<8x8xf32>
    %cst_17 = arith.constant dense<0xFF800000> : vector<8xf32>
    %24 = vector.multi_reduction <maximumf>, %23, %cst_17 [1] : vector<8x8xf32> to vector<8xf32>
    %25 = vector.shape_cast %24 : vector<8xf32> to vector<8x1xf32>
    %26 = vector.broadcast %25 : vector<8x1xf32> to vector<8x8xf32>
    %27 = arith.subf %23, %26 : vector<8x8xf32>
    %28 = math.exp %27 : vector<8x8xf32>
    %cst_18 = arith.constant dense<0.000000e+00> : vector<8xf32>
    %29 = vector.multi_reduction <add>, %28, %cst_18 [1] : vector<8x8xf32> to vector<8xf32>
    %30 = vector.shape_cast %29 : vector<8xf32> to vector<8x1xf32>
    %31 = tpu.reciprocal %30 {approx = true} : vector<8x1xf32> -> vector<8x1xf32>
    %32 = vector.broadcast %31 : vector<8x1xf32> to vector<8x8xf32>
    %33 = arith.mulf %28, %32 : vector<8x8xf32>
    %34 = arith.truncf %33 : vector<8x8xf32> to vector<8x8xbf16>
    %cst_19 = arith.constant dense<0.000000e+00> : vector<8x8xf32>
    %35 = tpu.matmul %34, %22, %cst_19 {dimension_numbers = #tpu.dot_dimension_numbers<[1], [0], [0], [1], [0, 0, 1, 1], [], []>} : vector<8x8xbf16>, vector<8x8xbf16>, vector<8x8xf32> -> vector<8x8xf32>
    %36 = vector.extract_strided_slice %17 {offsets = [0, 8], sizes = [8, 8], strides = [1, 1]} : vector<8x32xbf16> to vector<8x8xbf16>
    %37 = vector.extract_strided_slice %18 {offsets = [0, 8], sizes = [8, 8], strides = [1, 1]} : vector<8x32xbf16> to vector<8x8xbf16>
    %38 = vector.extract_strided_slice %19 {offsets = [0, 8], sizes = [8, 8], strides = [1, 1]} : vector<8x32xbf16> to vector<8x8xbf16>
    %cst_20 = arith.constant dense<0.000000e+00> : vector<8x8xf32>
    %39 = tpu.matmul %36, %37, %cst_20 {dimension_numbers = #tpu.dot_dimension_numbers<[1], [1], [0], [0], [0, 0, 1, 0], [], []>} : vector<8x8xbf16>, vector<8x8xbf16>, vector<8x8xf32> -> vector<8x8xf32>
    %cst_21 = arith.constant dense<0xFF800000> : vector<8xf32>
    %40 = vector.multi_reduction <maximumf>, %39, %cst_21 [1] : vector<8x8xf32> to vector<8xf32>
    %41 = vector.shape_cast %40 : vector<8xf32> to vector<8x1xf32>
    %42 = vector.broadcast %41 : vector<8x1xf32> to vector<8x8xf32>
    %43 = arith.subf %39, %42 : vector<8x8xf32>
    %44 = math.exp %43 : vector<8x8xf32>
    %cst_22 = arith.constant dense<0.000000e+00> : vector<8xf32>
    %45 = vector.multi_reduction <add>, %44, %cst_22 [1] : vector<8x8xf32> to vector<8xf32>
    %46 = vector.shape_cast %45 : vector<8xf32> to vector<8x1xf32>
    %47 = tpu.reciprocal %46 {approx = true} : vector<8x1xf32> -> vector<8x1xf32>
    %48 = vector.broadcast %47 : vector<8x1xf32> to vector<8x8xf32>
    %49 = arith.mulf %44, %48 : vector<8x8xf32>
    %50 = arith.truncf %49 : vector<8x8xf32> to vector<8x8xbf16>
    %cst_23 = arith.constant dense<0.000000e+00> : vector<8x8xf32>
    %51 = tpu.matmul %50, %38, %cst_23 {dimension_numbers = #tpu.dot_dimension_numbers<[1], [0], [0], [1], [0, 0, 1, 1], [], []>} : vector<8x8xbf16>, vector<8x8xbf16>, vector<8x8xf32> -> vector<8x8xf32>
    %52 = vector.extract_strided_slice %17 {offsets = [0, 16], sizes = [8, 8], strides = [1, 1]} : vector<8x32xbf16> to vector<8x8xbf16>
    %53 = vector.extract_strided_slice %18 {offsets = [0, 16], sizes = [8, 8], strides = [1, 1]} : vector<8x32xbf16> to vector<8x8xbf16>
    %54 = vector.extract_strided_slice %19 {offsets = [0, 16], sizes = [8, 8], strides = [1, 1]} : vector<8x32xbf16> to vector<8x8xbf16>
    %cst_24 = arith.constant dense<0.000000e+00> : vector<8x8xf32>
    %55 = tpu.matmul %52, %53, %cst_24 {dimension_numbers = #tpu.dot_dimension_numbers<[1], [1], [0], [0], [0, 0, 1, 0], [], []>} : vector<8x8xbf16>, vector<8x8xbf16>, vector<8x8xf32> -> vector<8x8xf32>
    %cst_25 = arith.constant dense<0xFF800000> : vector<8xf32>
    %56 = vector.multi_reduction <maximumf>, %55, %cst_25 [1] : vector<8x8xf32> to vector<8xf32>
    %57 = vector.shape_cast %56 : vector<8xf32> to vector<8x1xf32>
    %58 = vector.broadcast %57 : vector<8x1xf32> to vector<8x8xf32>
    %59 = arith.subf %55, %58 : vector<8x8xf32>
    %60 = math.exp %59 : vector<8x8xf32>
    %cst_26 = arith.constant dense<0.000000e+00> : vector<8xf32>
    %61 = vector.multi_reduction <add>, %60, %cst_26 [1] : vector<8x8xf32> to vector<8xf32>
    %62 = vector.shape_cast %61 : vector<8xf32> to vector<8x1xf32>
    %63 = tpu.reciprocal %62 {approx = true} : vector<8x1xf32> -> vector<8x1xf32>
    %64 = vector.broadcast %63 : vector<8x1xf32> to vector<8x8xf32>
    %65 = arith.mulf %60, %64 : vector<8x8xf32>
    %66 = arith.truncf %65 : vector<8x8xf32> to vector<8x8xbf16>
    %cst_27 = arith.constant dense<0.000000e+00> : vector<8x8xf32>
    %67 = tpu.matmul %66, %54, %cst_27 {dimension_numbers = #tpu.dot_dimension_numbers<[1], [0], [0], [1], [0, 0, 1, 1], [], []>} : vector<8x8xbf16>, vector<8x8xbf16>, vector<8x8xf32> -> vector<8x8xf32>
    %68 = vector.extract_strided_slice %17 {offsets = [0, 24], sizes = [8, 8], strides = [1, 1]} : vector<8x32xbf16> to vector<8x8xbf16>
    %69 = vector.extract_strided_slice %18 {offsets = [0, 24], sizes = [8, 8], strides = [1, 1]} : vector<8x32xbf16> to vector<8x8xbf16>
    %70 = vector.extract_strided_slice %19 {offsets = [0, 24], sizes = [8, 8], strides = [1, 1]} : vector<8x32xbf16> to vector<8x8xbf16>
    %cst_28 = arith.constant dense<0.000000e+00> : vector<8x8xf32>
    %71 = tpu.matmul %68, %69, %cst_28 {dimension_numbers = #tpu.dot_dimension_numbers<[1], [1], [0], [0], [0, 0, 1, 0], [], []>} : vector<8x8xbf16>, vector<8x8xbf16>, vector<8x8xf32> -> vector<8x8xf32>
    %cst_29 = arith.constant dense<0xFF800000> : vector<8xf32>
    %72 = vector.multi_reduction <maximumf>, %71, %cst_29 [1] : vector<8x8xf32> to vector<8xf32>
    %73 = vector.shape_cast %72 : vector<8xf32> to vector<8x1xf32>
    %74 = vector.broadcast %73 : vector<8x1xf32> to vector<8x8xf32>
    %75 = arith.subf %71, %74 : vector<8x8xf32>
    %76 = math.exp %75 : vector<8x8xf32>
    %cst_30 = arith.constant dense<0.000000e+00> : vector<8xf32>
    %77 = vector.multi_reduction <add>, %76, %cst_30 [1] : vector<8x8xf32> to vector<8xf32>
    %78 = vector.shape_cast %77 : vector<8xf32> to vector<8x1xf32>
    %79 = tpu.reciprocal %78 {approx = true} : vector<8x1xf32> -> vector<8x1xf32>
    %80 = vector.broadcast %79 : vector<8x1xf32> to vector<8x8xf32>
    %81 = arith.mulf %76, %80 : vector<8x8xf32>
    %82 = arith.truncf %81 : vector<8x8xf32> to vector<8x8xbf16>
    %cst_31 = arith.constant dense<0.000000e+00> : vector<8x8xf32>
    %83 = tpu.matmul %82, %70, %cst_31 {dimension_numbers = #tpu.dot_dimension_numbers<[1], [0], [0], [1], [0, 0, 1, 1], [], []>} : vector<8x8xbf16>, vector<8x8xbf16>, vector<8x8xf32> -> vector<8x8xf32>
    %84 = tpu.concatenate %35, %51, %67, %83 in 1 : vector<8x8xf32>, vector<8x8xf32>, vector<8x8xf32>, vector<8x8xf32> -> vector<8x32xf32>
    %85 = arith.truncf %84 : vector<8x32xf32> to vector<8x32xbf16>
    %c0_32 = arith.constant 0 : index
    %c0_33 = arith.constant 0 : index
    %86 = vector.load %arg8[%c0_32, %c0_33] : memref<32x32xbf16, #tpu.memory_space<vmem>>, vector<32x32xbf16>
    %cst_34 = arith.constant dense<0.000000e+00> : vector<8x32xf32>
    %87 = tpu.matmul %85, %86, %cst_34 {dimension_numbers = #tpu.dot_dimension_numbers<[1], [0], [0], [1], [0, 0, 1, 1], [], []>} : vector<8x32xbf16>, vector<32x32xbf16>, vector<8x32xf32> -> vector<8x32xf32>
    %c0_35 = arith.constant 0 : index
    %c0_36 = arith.constant 0 : index
    %88 = vector.load %arg9[%c0_35, %c0_36] : memref<1x32xf32, #tpu.memory_space<vmem>>, vector<1x32xf32>
    %89 = vector.broadcast %88 : vector<1x32xf32> to vector<8x32xf32>
    %90 = arith.addf %87, %89 : vector<8x32xf32>
    %c0_37 = arith.constant 0 : index
    %c0_38 = arith.constant 0 : index
    %c0_39 = arith.constant 0 : index
    %91 = vector.load %arg10[%c0_37, %c0_38, %c0_39] : memref<1x8x32xf32, #tpu.memory_space<vmem>>, vector<1x8x32xf32>
    %92 = vector.shape_cast %91 : vector<1x8x32xf32> to vector<8x32xf32>
    %93 = vector.shape_cast %90 : vector<8x32xf32> to vector<1x8x32xf32>
    tpu.vector_store %arg10[%c0_37, %c0_38, %c0_39], %93 {strides = array<i32>} : memref<1x8x32xf32, #tpu.memory_space<vmem>>, vector<1x8x32xf32>,
    return
  }
  func.func @transform_0(%arg0: i32) -> (i32, i32, i32) {
    %c0_i32 = arith.constant 0 : i32
    %c0_i32_0 = arith.constant 0 : i32
    %c0_i32_1 = arith.constant 0 : i32
    return %arg0, %c0_i32, %c0_i32_0 : i32, i32, i32
  }
  func.func @transform_1(%arg0: i32) -> (i32, i32) {
    %c0_i32 = arith.constant 0 : i32
    %c0_i32_0 = arith.constant 0 : i32
    %c0_i32_1 = arith.constant 0 : i32
    return %c0_i32, %c0_i32_0 : i32, i32
  }
  func.func @transform_2(%arg0: i32) -> (i32, i32) {
    %c0_i32 = arith.constant 0 : i32
    %c0_i32_0 = arith.constant 0 : i32
    %c0_i32_1 = arith.constant 0 : i32
    return %c0_i32, %c0_i32_0 : i32, i32
  }
  func.func @transform_3(%arg0: i32) -> (i32, i32) {
    %c0_i32 = arith.constant 0 : i32
    %c0_i32_0 = arith.constant 0 : i32
    %c0_i32_1 = arith.constant 0 : i32
    return %c0_i32, %c0_i32_0 : i32, i32
  }
  func.func @transform_4(%arg0: i32) -> (i32, i32) {
    %c0_i32 = arith.constant 0 : i32
    %c0_i32_0 = arith.constant 0 : i32
    %c0_i32_1 = arith.constant 0 : i32
    return %c0_i32, %c0_i32_0 : i32, i32
  }
  func.func @transform_5(%arg0: i32) -> (i32, i32) {
    %c0_i32 = arith.constant 0 : i32
    %c0_i32_0 = arith.constant 0 : i32
    %c0_i32_1 = arith.constant 0 : i32
    return %c0_i32, %c0_i32_0 : i32, i32
  }
  func.func @transform_6(%arg0: i32) -> (i32, i32) {
    %c0_i32 = arith.constant 0 : i32
    %c0_i32_0 = arith.constant 0 : i32
    %c0_i32_1 = arith.constant 0 : i32
    return %c0_i32, %c0_i32_0 : i32, i32
  }
  func.func @transform_7(%arg0: i32) -> (i32, i32) {
    %c0_i32 = arith.constant 0 : i32
    %c0_i32_0 = arith.constant 0 : i32
    %c0_i32_1 = arith.constant 0 : i32
    return %c0_i32, %c0_i32_0 : i32, i32
  }
  func.func @transform_8(%arg0: i32) -> (i32, i32) {
    %c0_i32 = arith.constant 0 : i32
    %c0_i32_0 = arith.constant 0 : i32
    %c0_i32_1 = arith.constant 0 : i32
    return %c0_i32, %c0_i32_0 : i32, i32
  }
  func.func @transform_9(%arg0: i32) -> (i32, i32, i32) {
    %c0_i32 = arith.constant 0 : i32
    %c0_i32_0 = arith.constant 0 : i32
    %c0_i32_1 = arith.constant 0 : i32
    return %arg0, %c0_i32, %c0_i32_0 : i32, i32, i32
  }
}

</mosaic_0001>

<bundles_post_ra>
// kernel: tpu_custom_call.1
= control target key start
LH: loop header
LB: loop body
LE: loop exit
PB: predicated region body
PF: predicated region fallthrough
CT: control target
= control target key end

     0   :  { %s2104_s0 = inlined_call_operand.hbm [shape: bf16[2,8,32], index: 0, kind: input, shape index: {}]   ;;  %s2105_s1 = inlined_call_operand.hbm [shape: bf16[32,32], index: 1, kind: input, shape index: {}]   ;;  %s2106_s2 = inlined_call_operand.hbm [shape: bf16[32,32], index: 2, kind: input, shape index: {}]   ;;  %s2107_s3 = inlined_call_operand.hbm [shape: bf16[32,32], index: 3, kind: input, shape index: {}]   ;;  %s2108_s4 = inlined_call_operand.vmem [shape: f32[1,32], index: 4, kind: input, shape index: {}]   ;;  %s2109_s5 = inlined_call_operand.vmem [shape: f32[1,32], index: 5, kind: input, shape index: {}]   ;;  %s2110_s6 = inlined_call_operand.vmem [shape: f32[1,32], index: 6, kind: input, shape index: {}]   ;;  %s2111_s7 = inlined_call_operand.vmem [shape: bf16[32,32], index: 7, kind: input, shape index: {}]   ;;  %s2112_s8 = inlined_call_operand.vmem [shape: f32[1,32], index: 8, kind: input, shape index: {}]   ;;  %s2113_s9 = inlined_call_operand.hbm [shape: f32[2,8,32], index: 9, kind: output, shape index: {}]  }
   0x1   :  { %2120 = sst [smem:[#allocation17_spill]] %s2113_s9 }
   0x2   :  { %14 = vsyncpa [#allocation3], 0 }
   0x3   :  { %16 = vsyncpa [#allocation3 + $0x1], 0 }
   0x4   :  { %17 = vsyncpa [#allocation6], 0 }
   0x5   :  { %18 = vsyncpa [#allocation9], 0 }
   0x6   :  { %19 = vsyncpa [#allocation4], 0 }
   0x7   :  { %21 = vsyncpa [#allocation4 + $0x1], 0  ;;  %s1743_s30 = smov 0   ;;  %s1745_s10 = smov 0  }
   0x8   :  { %s1747_s11 = smov 0   ;;  %s1749_s12 = smov 0  }
   0x9 LB: > { %2121 = sst [smem:[#allocation15_spill]] %s1664_s30  ;;  %s1764_s13 = sadd.s32 4294967295, %s1676_s12   ;;  %s1676_s12 = sphi %s1749_s12, %s2145_s12   ;;  %s1672_s11 = sphi %s1747_s11, %s2144_s11   ;;  %s1668_s10 = sphi %s1745_s10, %s2143_s10   ;;  %s1664_s30 = sphi %s1743_s30, %s2142_s30  }
   0xa   : > { %s1227_s14 = sadd.s32 4294967294, %s1676_s12   ;;  %p47_p0 = scmp.ne.s32.totalorder %s1668_s10, %s1664_s30 }
   0xb   : > { %p2114_p1 = scmp.eq.s32.totalorder %s1764_s13, 0  ;;  %p245_p3 = scmp.eq.s32.totalorder %s1227_s14, 1 }
   0xc   : > { %p1228_p5 = scmp.ge.s32.totalorder %s1676_s12, 1  ;;  %p252_p7 = scmp.lt.s32.totalorder %s1676_s12, 3 }
   0xd   : > { %p1773_p4 = por %p2114_p1, %p47_p0  ;;  %p1778_p6 = por %p245_p3, %p47_p0 }
   0xe   : > { %p1783_p8 = pnand %p1228_p5, %p252_p7  ;;  %s1678_s18 = smov [#allocation5]  }
   0xf   : > { %s2122_s15 = scalar_select %p1773_p4, 1, 0 }
  0x10   : > { %s2123_s16 = scalar_select %p1778_p6, 1, 0 }
  0x11   : > { %s2125_s17 = scalar_select %p1783_p8, 1, 0 }
  0x12   : > { %2124 = sst [smem:[#allocation16_spill]] %s2123_s16  ;;  %s264_s19 = sshll.u32 %s1678_s18, 4  ;;  %s1787_s19 = int_to_ptr.vmem [resolvable:$true] %s264_s19 }
  0x13   : > { %p1393_p9 = pneg %p1783_p8  ;;  %s1679_s21 = smov [#allocation7]  }
  0x14   : > { %s277_s22 = sshll.u32 %s1679_s21, 4  ;;  %s1680_s23 = smov [#allocation8]   ;;  %s1798_s22 = int_to_ptr.vmem [resolvable:$true] %s277_s22 }
  0x15   : > { %p1794_p11 = pnand %p1393_p9, %p2114_p1  ;;  %s1800_s24 = sshll.u32 %s1680_s23, 4  ;;  %s291_s24 = int_to_ptr.vmem [resolvable:$true] %s1800_s24 }
  0x16   : > { %s1488_s27 = scalar_lea.hbm %s2105_s1, 256 }
  0x17   : > { %p1489_p12 = scmp.ne.s32.totalorder %s2105_s1, %s1488_s27  ;;  %p1810_p13 = pneg %p1794_p11 }
  0x18   : > { %p1495_p5 = scmp.lt.u32.totalorder %s1488_s27, %s2105_s1 }
  0x19   : > { %p1491_p0 = pnand %p1810_p13, %p1489_p12 }
  0x1b   : > { %p1492_p3 = pneg %p1491_p0 }
  0x1d   : > { %p1497_p7 = pnand %p1495_p5, %p1492_p3 }
  0x1f   : > { %1500 = shalt.err (!%p1497_p7)
}
  0x20   : > { %s1501_s23 = scalar_lea.vmem %s1787_s19, 256  ;;  %p1509_p2 = scmp.lt.s32.totalorder %s1787_s19, %s1787_s19 }
  0x21   : > { %p1502_p9 = scmp.ne.s32.totalorder %s1787_s19, %s1501_s23  ;;  %p1510_p6 = scmp.lt.s32.totalorder %s1501_s23, %s1501_s23 }
  0x23   : > { %p1504_p10 = pnand %p1502_p9, %p1810_p13  ;;  %p1511_p12 = por %p1510_p6, %p1509_p2 }
  0x25   : > { %p1505_p1 = pneg %p1504_p10 }
  0x27   : > { %p1512_p0 = pnand %p1511_p12, %p1505_p1 }
  0x29   : > { %1515 = shalt.err (!%p1512_p0)
}
  0x2a   : > { %s1681_s25 = smov 64   ;;  %s1682_s26 = smov 4  }
  0x2b   : > { %1396 = dma.hbm_to_vmem [thread:$0]  (!%p1794_p11), %s2105_s1, 256, %s1787_s19, [#allocation6], %s1681_s25, %s1681_s25, %s1682_s26  }
  0x2c   : > { %s1516_s21 = scalar_lea.hbm %s2106_s2, 256 }
  0x2d   : > { %p1517_p1 = scmp.ne.s32.totalorder %s2106_s2, %s1516_s21  ;;  %p1523_p10 = scmp.lt.u32.totalorder %s1516_s21, %s2106_s2 }
  0x2f   : > { %p1519_p2 = pnand %p1517_p1, %p1810_p13 }
  0x31   : > { %p1520_p6 = pneg %p1519_p2 }
  0x33   : > { %p1525_p3 = pnand %p1523_p10, %p1520_p6 }
  0x35   : > { %1528 = shalt.err (!%p1525_p3)
}
  0x36   : > { %s1529_s19 = scalar_lea.vmem %s1798_s22, 256  ;;  %p1537_p12 = scmp.lt.s32.totalorder %s1798_s22, %s1798_s22 }
  0x37   : > { %p1530_p5 = scmp.ne.s32.totalorder %s1798_s22, %s1529_s19  ;;  %p1538_p0 = scmp.lt.s32.totalorder %s1529_s19, %s1529_s19 }
  0x39   : > { %p1532_p7 = pnand %p1530_p5, %p1810_p13  ;;  %p1539_p1 = por %p1538_p0, %p1537_p12 }
  0x3b   : > { %p1533_p9 = pneg %p1532_p7 }
  0x3d   : > { %p1540_p2 = pnand %p1539_p1, %p1533_p9 }
  0x3f   : > { %1543 = shalt.err (!%p1540_p2)
}
  0x40   : > { %1399 = dma.hbm_to_vmem [thread:$0]  (!%p1794_p11), %s2106_s2, 256, %s1798_s22, [#allocation6], %s1681_s25, %s1681_s25, %s1682_s26  }
  0x41   : > { %s1544_s28 = scalar_lea.hbm %s2107_s3, 256 }
  0x42   : > { %p1545_p6 = scmp.ne.s32.totalorder %s2107_s3, %s1544_s28  ;;  %p1551_p5 = scmp.lt.u32.totalorder %s1544_s28, %s2107_s3 }
  0x44   : > { %p1547_p10 = pnand %p1545_p6, %p1810_p13 }
  0x46   : > { %p1548_p3 = pneg %p1547_p10 }
  0x48   : > { %p1553_p7 = pnand %p1551_p5, %p1548_p3 }
  0x4a   : > { %1556 = shalt.err (!%p1553_p7)
}
  0x4b   : > { %s1557_s19 = scalar_lea.vmem %s291_s24, 256  ;;  %p1565_p1 = scmp.lt.s32.totalorder %s291_s24, %s291_s24 }
  0x4c   : > { %p1558_p9 = scmp.ne.s32.totalorder %s291_s24, %s1557_s19  ;;  %p1566_p2 = scmp.lt.s32.totalorder %s1557_s19, %s1557_s19 }
  0x4e   : > { %p1560_p12 = pnand %p1558_p9, %p1810_p13  ;;  %p1567_p4 = por %p1566_p2, %p1565_p1 }
  0x50   : > { %p1561_p0 = pneg %p1560_p12 }
  0x52   : > { %p1568_p8 = pnand %p1567_p4, %p1561_p0 }
  0x54   : > { %1571 = shalt.err (!%p1568_p8)
}
  0x55   : > { %1402 = dma.hbm_to_vmem [thread:$0]  (!%p1794_p11), %s2107_s3, 256, %s291_s24, [#allocation9], %s1681_s25, %s1681_s25, %s1682_s26  }
  0x56   : > { %s1883_s14 = sadd.s32 1, %s1676_s12   ;;  %s34_s30 = sadd.s32 1, %s1672_s11 }
  0x57   : > { %s31_s20 = ssub.s32 %s1676_s12, %s1883_s14  ;;  %p41_p8 = scmp.ne.s32.totalorder %s1672_s11, %s1668_s10 }
  0x58   : > { %p32_p4 = scmp.eq.s32.totalorder %s31_s20, 0  ;;  %p42_p13 = scmp.eq.s32.totalorder %s1676_s12, 0 }
  0x59   : > { %p1414_p6 = scmp.lt.s32.totalorder %s1676_s12, 2  ;;  %p2128_p3 = scmp.eq.s32.totalorder %s1764_s13, 1 }
  0x5a   : > { %s1893_s16 = scalar_select %p32_p4, %s1672_s11, %s34_s30  }
  0x5b   : > { %p43_p10 = por %p42_p13, %p41_p8  ;;  %p1897_p5 = por %p2128_p3, %p41_p8 }
  0x5c   : > { %s319_s28 = sand.u32 1, %s1672_s11   ;;  %s1234_s29 = sshll.u32 %s1676_s12, 6 }
  0x5d   : > { %s1233_s24 = sshll.u32 %s319_s28, 2  ;;  %s1906_s18 = scalar_lea.hbm %s2104_s0, %s1234_s29 }
  0x5e   : > { %s323_s21 = scalar_lea.vmem [#allocation2], %s1233_s24  ;;  %p1908_p11 = pnand %p1414_p6, %p43_p10 }
  0x5f   : > { %s330_s23 = sshll.u32 %s323_s21, 4  ;;  %s320_s22 = scalar_lea.sflag [#allocation3], %s319_s28  ;;  %s1912_s23 = int_to_ptr.vmem [resolvable:$true] %s330_s23 }
  0x60   : > { %s1572_s9 = scalar_lea.hbm %s1906_s18, 64  ;;  %p1574_p9 = pneg %p1908_p11 }
  0x61   : > { %p1573_p7 = scmp.ne.s32.totalorder %s1906_s18, %s1572_s9  ;;  %s1577_s29 = scalar_lea.hbm %s2104_s0, 128 }
  0x62   : > { %p1578_p1 = scmp.lt.u32.totalorder %s1906_s18, %s2104_s0  ;;  %p1579_p2 = scmp.lt.u32.totalorder %s1577_s29, %s1572_s9 }
  0x63   : > { %p1575_p12 = pnand %p1574_p9, %p1573_p7  ;;  %p1581_p8 = scmp.lt.u32.totalorder %s1572_s9, %s1906_s18 }
  0x64   : > { %p1580_p4 = por %p1579_p2, %p1578_p1 }
  0x65   : > { %p1576_p0 = pneg %p1575_p12 }
  0x66   : > { %p1582_p13 = por %p1581_p8, %p1580_p4 }
  0x68   : > { %p1583_p6 = pnand %p1582_p13, %p1576_p0 }
  0x6a   : > { %1586 = shalt.err (!%p1583_p6)
}
  0x6b   : > { %s1587_s28 = scalar_lea.vmem %s1912_s23, 64  ;;  %s1683_s26 = smov [#allocation2]  }
  0x6c   : > { %p1588_p10 = scmp.ne.s32.totalorder %s1912_s23, %s1587_s28  ;;  %s1592_s21 = sshll.u32 %s1683_s26, 4  ;;  %s1593_s21 = int_to_ptr.vmem [resolvable:$false] %s1592_s21 }
  0x6d   : > { %s1594_s20 = scalar_lea.vmem %s1593_s21, 128  ;;  %p1595_p12 = scmp.lt.s32.totalorder %s1912_s23, %s1593_s21 }
  0x6e   : > { %p1590_p3 = pnand %p1588_p10, %p1574_p9  ;;  %p1596_p1 = scmp.lt.s32.totalorder %s1594_s20, %s1587_s28 }
  0x70   : > { %p1591_p7 = pneg %p1590_p3  ;;  %p1597_p2 = por %p1596_p1, %p1595_p12 }
  0x72   : > { %p1598_p4 = pnand %p1597_p2, %p1591_p7 }
  0x74   : > { %1601 = shalt.err (!%p1598_p4)
}
  0x75   : > { %1406 = dma.hbm_to_vmem [thread:$0]  (!%p1908_p11), %s1906_s18, 64, %s1912_s23, %s320_s22  }
  0x76   : > { %p2131_p0 = scmp.ne.s32.totalorder %s2125_s17, 0 }
  0x77   : > { %s1942_s9 = sand.u32 (!%p2131_p0), 1, %s1668_s10   ;;  %p2132_p9 = scmp.ne.s32.totalorder (!%p2131_p0), %s2122_s15, 0 }
  0x78   : > { %339 = sbr.rel (%p2131_p0) target bundleno = 1586 (0x632), region = 56  ;;  %s1236_s30 = sshll.u32 (!%p2131_p0), %s1942_s9, 2 }
  0x79   : > { %s342_s29 = scalar_lea.sflag (!%p2131_p0), [#allocation3], %s1942_s9  ;;  %s345_s24 = scalar_lea.vmem (!%p2131_p0), [#allocation2], %s1236_s30 }
  0x7f   : > { %1647 = dma.done.wait (%p2132_p9), %s342_s29, 64  }
  0x80   : > { %1649 = vsyncadd (%p2132_p9), %s342_s29, 4294967232  ;;  %p2133_p8 = scmp.eq.s32.totalorder %s1764_s13, 0 }
  0x82   : > { %1651 = dma.done.wait (%p2133_p8), [#allocation6], 512   ;;  %p2134_p11 = pmov %p2133_p8 }
  0x83   : > { %p2135_p13 = pmov %p2133_p8 }
  0x84   : > { %1653 = vsyncadd (%p2134_p11), [#allocation6], 4294966784 }
  0x85   : > { %1655 = dma.done.wait (%p2135_p13), [#allocation9], 256   ;;  %p2136_p6 = pmov %p2133_p8 }
  0x86   : > { %v1684_v0 = vmov 0.0   ;;  %vm1685_vm0 = vmmov 0   ;;  %v1464_v1 = vld [vmem:[#allocation7] sm:$0xff]   ;;  %v1465_v2 = vld [vmem:[#allocation5] sm:$0xff]   ;;  %v1466_v3 = vld [vmem:[#allocation7 + $0x8] sm:$0xff]   ;;  %vm417_vm1 = vcmask 261120  }
  0x87   : > { %1657 = vsyncadd (%p2136_p6), [#allocation9], 4294967040  ;;  %1305 = vmatprep.subr.bf16.mxu1 %v1684_v0  ;;  %1297 = vmatprep.subr.bf16.mxu0 %v1684_v0  ;;  %v393_v4 = vld [vmem:[%s345_s24] sm:$0xf]  ;;  %v1467_v5 = vld [vmem:[#allocation5 + $0x8] sm:$0xff]   ;;  %vm590_vm2 = vcmask 64512  }
  0x88   : > { %1309 = vmatprep.mubr.msk.bf16.mxu1 %vm1685_vm0, %v1684_v0  ;;  %1301 = vmatprep.mubr.msk.bf16.mxu0 %vm1685_vm0, %v1684_v0  ;;  %v1245_v6 = vld [vmem:[%s2109_s5] ss:$0 sm:$0xff]  ;;  %s1686_s19 = smov 112   ;;  %s1687_s22 = smov 120   ;;  %v1468_v21 = vld [vmem:[#allocation8] sm:$0xff]   ;;  %vm652_vm3 = vcmask 1043456  }
  0x89   : > { %1306 = vmatpush3.bf16.msra.mxu1 %v1464_v1  ;;  %1298 = vmatpush3.bf16.msra.mxu0 %v1465_v2  ;;  %v1241_v7 = vld [vmem:[%s2108_s4] ss:$0 sm:$0xff]  ;;  %s1688_s25 = smov 104   ;;  %s1689_s30 = smov 8   ;;  %vm1042_vm4 = vcmask 130048   ;;  %vm1044_vm5 = vcmask 195584  }
  0x8a   : > { %1307 = vmatprep.subr.bf16.mxu1 %v1684_v0  ;;  %1299 = vmatprep.subr.bf16.mxu0 %v1684_v0  ;;  %v1469_v22 = vld [vmem:[#allocation8 + $0x8] sm:$0xff]   ;;  %s1690_s15 = smov 16   ;;  %s1691_s17 = smov 24  }
  0x8b   : > { %v1249_v37 = vld [vmem:[%s2110_s6] ss:$0 sm:$0xff]  ;;  %s1240_s18 = sshll.u32 %s1942_s9, 3  ;;  %s2137_s20 = sld [smem:[#allocation17_spill]] }
  0x8c   : > { %s1692_s24 = smov [#allocation10]  }
  0x8d   : > { %1308 = vmatpush3.bf16.msra.mxu1 %v1466_v3  ;;  %1300 = vmatpush3.bf16.msra.mxu0 %v1467_v5 }
  0x8e   : > { %1321 = vmatprep.subr.bf16.mxu1 %v1684_v0  ;;  %1313 = vmatprep.subr.bf16.mxu0 %v1684_v0 }
  0x90   : > { %1310 = vmatmul.mubr.msk.bf16.vlgmr.msra.gmra.mrb[0].mxu1 %vm417_vm1, %v393_v4  ;;  %1302 = vmatmul.mubr.msk.bf16.vlgmr.msra.gmra.mrb[0].mxu0 %vm417_vm1, %v393_v4 }
  0x91   : > { %1323 = vmatprep.mubr.msk.bf16.mxu1 %vm1685_vm0, %v1684_v0  ;;  %1317 = vmatprep.mubr.msk.bf16.mxu0 %vm1685_vm0, %v1684_v0 }
  0x92   : > { %1314 = vmatpush3.bf16.msra.mxu0 %v1468_v21 }
  0x93   : > { %1315 = vmatprep.subr.bf16.mxu0 %v1684_v0 }
  0x96   : > { %1316 = vmatpush3.bf16.msra.mxu0 %v1469_v22 }
  0x97   : > { %1327 = vmatprep.subr.bf16.mxu0 %v1684_v0 }
  0x99   : > { %1318 = vmatmul.mubr.msk.bf16.vlgmr.msra.gmra.mrb[4].mxu0 %vm417_vm1, %v393_v4 }
  0x9a   : > { %1329 = vmatprep.mubr.msk.bf16.mxu0 %vm1685_vm0, %v1684_v0 }
 0x163   : > { %v518_v8 = vpop.f32.mrb[0].mxu1  ;;  %v455_v11 = vpop.f32.mrb[0].mxu0 }
 0x164   : > { %v519_v9 = vadd.f32 %v1245_v6, %v518_v8  ;;  %v1311_v10 = vpop.f32.mrb[1].mxu1  ;;  %v456_v13 = vadd.f32 %v1241_v7, %v455_v11  ;;  %v1303_v14 = vpop.f32.mrb[1].mxu0 }
 0x165   : > { %v521_v12 = vpop.f32.mrb[2].mxu1  ;;  %v458_v17 = vpop.f32.mrb[2].mxu0 }
 0x166   : > { %v588_v15 = vpack.c.bf16 %v519_v9, %v519_v9  ;;  %v1312_v16 = vpop.f32.mrb[3].mxu1  ;;  %v1304_v18 = vpop.f32.mrb[3].mxu0  ;;  %v587_v19 = vpack.c.bf16 %v456_v13, %v456_v13 }
 0x168   : > { %811 = vrot.lane.b32.xlu1 %v588_v15, %s1686_s19  ;;  %700 = vrot.lane.b32.xlu0 %v588_v15, %s1687_s22  ;;  %v595_v20 = vsel %vm590_vm2, %v588_v15, 0 }
 0x169   : > { %1322 = vmatpush3.bf16.xpose.msra.mxu1 %v595_v20 }
 0x16a   : > { %1333 = vmatprep.subr.bf16.mxu1 %v1684_v0 }
 0x16c   : > { %809 = vrot.lane.b32.xlu1 %v587_v19, %s1686_s19  ;;  %697 = vrot.lane.b32.xlu0 %v587_v19, %s1687_s22  ;;  %v581_v38 = vpop.f32.mrb[4].mxu0 }
 0x16d   : > { %v582_v39 = vadd.f32 %v1249_v37, %v581_v38  ;;  %v1319_v40 = vpop.f32.mrb[5].mxu0 }
 0x16e   : > { %v584_v41 = vpop.f32.mrb[6].mxu0 }
 0x16f   : > { %v589_v42 = vpack.c.bf16 %v582_v39, %v582_v39  ;;  %v1320_v43 = vpop.f32.mrb[7].mxu0 }
 0x170   : > { %919 = vrot.lane.b32.xlu1 %v587_v19, %s1688_s25  ;;  %921 = vrot.lane.b32.xlu0 %v588_v15, %s1688_s25  ;;  %v1470_v43 = vld [vmem:[%s2111_s7] sm:$0xff]  }
 0x171   : > { %1324 = vmatmul.mubr.msk.bf16.vlgmr.msra.gmra.mrb[4].mxu1 %vm590_vm2, %v587_v19  ;;  %v654_v44 = vsel %vm652_vm3, %v589_v42, 0 }
 0x172   : > { %1335 = vmatprep.mubr.msk.bf16.mxu1 %vm1685_vm0, %v1684_v0  ;;  %1328 = vmatpush3.bf16.msra.mxu0 %v654_v44 }
 0x173   : > { %1339 = vmatprep.subr.bf16.mxu0 %v1684_v0 }
 0x1da   : > { %v701_v23 = vpop.permute.xlu0 %700  ;;  %v812_v25 = vpop.permute.xlu1 %811 }
 0x1db   : > { %v706_v24 = vsel %vm590_vm2, %v701_v23, 0  ;;  %v817_v27 = vsel %vm590_vm2, %v812_v25, 0 }
 0x1dc   : > { %1334 = vmatpush3.bf16.xpose.msra.mxu1 %v706_v24 }
 0x1dd   : > { %1345 = vmatprep.subr.bf16.mxu1 %v1684_v0 }
 0x1de   : > { %v698_v26 = vpop.permute.xlu0 %697  ;;  %v810_v29 = vpop.permute.xlu1 %809 }
 0x1e2   : > { %v922_v28 = vpop.permute.xlu0 %921  ;;  %v920_v31 = vpop.permute.xlu1 %919 }
 0x1e3   : > { %1336 = vmatmul.mubr.msk.bf16.vlgmr.msra.gmra.mrb[8].mxu1 %vm590_vm2, %v698_v26  ;;  %v927_v30 = vsel %vm590_vm2, %v922_v28, 0 }
 0x1e4   : > { %1346 = vmatpush3.bf16.xpose.msra.mxu1 %v817_v27  ;;  %1347 = vmatprep.mubr.msk.bf16.mxu1 %vm1685_vm0, %v1684_v0 }
 0x1e5   : > { %1357 = vmatprep.subr.bf16.mxu1 %v1684_v0 }
 0x1eb   : > { %1348 = vmatmul.mubr.msk.bf16.vlgmr.msra.gmra.mrb[12].mxu1 %vm590_vm2, %v810_v29 }
 0x1ec   : > { %1358 = vmatpush3.bf16.xpose.msra.mxu1 %v927_v30  ;;  %1359 = vmatprep.mubr.msk.bf16.mxu1 %vm1685_vm0, %v1684_v0 }
 0x1ed   : > { %1369 = vmatprep.subr.bf16.mxu1 %v1684_v0 }
 0x1f3   : > { %1360 = vmatmul.mubr.msk.bf16.vlgmr.msra.gmra.mrb[16].mxu1 %vm590_vm2, %v920_v31 }
 0x1f4   : > { %1373 = vmatprep.mubr.msk.bf16.mxu1 %vm1685_vm0, %v1684_v0  ;;  %1370 = vmatpush3.bf16.msra.mxu1 %v1470_v43 }
 0x1f5   : > { %1371 = vmatprep.subr.bf16.mxu1 %v1684_v0 }
 0x244   : > { %v631_v32 = vpop.f32.mrb[4].mxu1 }
 0x245   : > { %v1325_v33 = vpop.f32.mrb[5].mxu1  ;;  %v637_v34 = vsel %vm590_vm2, %v631_v32, -inf }
 0x246   : > { %638 = vmax.xlane.f32.xlu0 %v637_v34  ;;  %v634_v35 = vpop.f32.mrb[6].mxu1 }
 0x247   : > { %v1326_v36 = vpop.f32.mrb[7].mxu1 }
 0x2b6   : > { %v742_v45 = vpop.f32.mrb[8].mxu1 }
 0x2b7   : > { %v1337_v46 = vpop.f32.mrb[9].mxu1  ;;  %v748_v47 = vsel %vm590_vm2, %v742_v45, -inf }
 0x2b8   : > { %749 = vmax.xlane.f32.xlu1 %v748_v47  ;;  %v745_v48 = vpop.f32.mrb[10].mxu1 }
 0x2b9   : > { %v1338_v49 = vpop.f32.mrb[11].mxu1  ;;  %v1471_v48 = vld [vmem:[%s2111_s7 + $0x8] sm:$0xff]  }
 0x2ba   : > { %1372 = vmatpush3.bf16.msra.mxu1 %v1471_v48 }
 0x2be   : > { %v853_v50 = vpop.f32.mrb[12].mxu1 }
 0x2bf   : > { %v1349_v51 = vpop.f32.mrb[13].mxu1  ;;  %v859_v52 = vsel %vm590_vm2, %v853_v50, -inf }
 0x2c0   : > { %860 = vmax.xlane.f32.xlu0 %v859_v52  ;;  %v856_v53 = vpop.f32.mrb[14].mxu1 }
 0x2c1   : > { %v1350_v54 = vpop.f32.mrb[15].mxu1 }
 0x2c6   : > { %v963_v55 = vpop.f32.mrb[16].mxu1 }
 0x2c7   : > { %v1361_v56 = vpop.f32.mrb[17].mxu1  ;;  %v969_v57 = vsel %vm590_vm2, %v963_v55, -inf }
 0x2c8   : > { %970 = vmax.xlane.f32.xlu0 %v969_v57  ;;  %v966_v58 = vpop.f32.mrb[18].mxu1 }
 0x2c9   : > { %v1362_v59 = vpop.f32.mrb[19].mxu1 }
 0x2d3   : > { %v639_v60 = vpop.xlane.xlu0 %638 }
 0x2d4   : > { %v640_v61 = vsub.f32 %v631_v32, %v639_v60 }
 0x2d6   : > { %v641_v62 = vmul.f32 1.442695, %v640_v61 }
 0x2d8   : > { %1472 = vpow2.f32 %v641_v62 }
 0x2e2   : > { %v1473_v63 = vpop.eup %1472 }
 0x2e3   : > { %v643_v1 = vsel %vm590_vm2, %v1473_v63, 0.0 }
 0x2e4   : > { %644 = vadd.xlane.f32.xlu1 %v643_v1 }
 0x2f5   : > { %761 = vrot.lane.b32.xlu1 %v589_v42, %s1687_s22  ;;  %s1266_s22 = sshll.u32 %s1764_s13, 7  ;;  %s1115_s13 = scalar_lea.sflag [#allocation4], %s1942_s9 }
 0x345   : > { %v750_v2 = vpop.xlane.xlu1 %749 }
 0x346   : > { %v751_v3 = vsub.f32 %v742_v45, %v750_v2 }
 0x348   : > { %v752_v4 = vmul.f32 1.442695, %v751_v3 }
 0x34a   : > { %1474 = vpow2.f32 %v752_v4 }
 0x34d   : > { %v861_v5 = vpop.xlane.xlu0 %860 }
 0x34e   : > { %v862_v6 = vsub.f32 %v853_v50, %v861_v5 }
 0x350   : > { %v863_v7 = vmul.f32 1.442695, %v862_v6 }
 0x352   : > { %1476 = vpow2.f32 %v863_v7 }
 0x354   : > { %v1475_v8 = vpop.eup %1474 }
 0x355   : > { %v971_v9 = vpop.xlane.xlu0 %970  ;;  %v754_v10 = vsel %vm590_vm2, %v1475_v8, 0.0 }
 0x356   : > { %v972_v11 = vsub.f32 %v963_v55, %v971_v9  ;;  %755 = vadd.xlane.f32.xlu0 %v754_v10 }
 0x358   : > { %v973_v12 = vmul.f32 1.442695, %v972_v11 }
 0x35a   : > { %1478 = vpow2.f32 %v973_v12 }
 0x35c   : > { %v1477_v13 = vpop.eup %1476 }
 0x35d   : > { %v865_v14 = vsel %vm590_vm2, %v1477_v13, 0.0 }
 0x35e   : > { %866 = vadd.xlane.f32.xlu1 %v865_v14 }
 0x364   : > { %v1479_v15 = vpop.eup %1478 }
 0x365   : > { %v975_v16 = vsel %vm590_vm2, %v1479_v15, 0.0 }
 0x366   : > { %976 = vadd.xlane.f32.xlu0 %v975_v16 }
 0x36f   : > { %981 = vrot.lane.b32.xlu1 %v589_v42, %s1688_s25  ;;  %s391_s25 = scalar_lea.vmem [#allocation10], %s1240_s18 }
 0x370   : > { %s1128_s28 = sshll.u32 %s391_s25, 4  ;;  %s2061_s28 = int_to_ptr.vmem [resolvable:$true] %s1128_s28 }
 0x371   : > { %v645_v17 = vpop.xlane.xlu1 %644  ;;  %s1602_s29 = scalar_lea.vmem %s2061_s28, 128 }
 0x372   : > { %1480 = vrcp.f32 %v645_v17  ;;  %p1603_p10 = scmp.ne.s32.totalorder %s2061_s28, %s1602_s29 }
 0x374   : > { %p1604_p3 = pnand %p1603_p10, %p1897_p5 }
 0x375   : > { %v762_v19 = vpop.permute.xlu1 %761 }
 0x376   : > { %v767_v22 = vsel %vm652_vm3, %v762_v19, 0  ;;  %p1605_p7 = pneg %p1604_p3 }
 0x37c   : > { %v1481_v18 = vpop.eup %1480  ;;  %871 = vrot.lane.b32.xlu0 %v589_v42, %s1686_s19 }
 0x37d   : > { %v647_v20 = vmul.f32 %v1481_v18, %v1473_v63  ;;  %v1261_v63 = vld [vmem:[%s2112_s8] ss:$0 sm:$0xff] }
 0x37f   : > { %v648_v21 = vpack.c.bf16 %v647_v20, %v647_v20 }
 0x381   : > { %1330 = vmatmul.mubr.msk.bf16.vlgmr.msra.gmra.mrb[8].mxu0 %vm590_vm2, %v648_v21 }
 0x382   : > { %1340 = vmatpush3.bf16.msra.mxu0 %v767_v22  ;;  %1341 = vmatprep.mubr.msk.bf16.mxu0 %vm1685_vm0, %v1684_v0 }
 0x383   : > { %1351 = vmatprep.subr.bf16.mxu0 %v1684_v0 }
 0x3e3   : > { %v756_v23 = vpop.xlane.xlu0 %755 }
 0x3e4   : > { %1482 = vrcp.f32 %v756_v23 }
 0x3eb   : > { %v867_v24 = vpop.xlane.xlu1 %866 }
 0x3ec   : > { %1484 = vrcp.f32 %v867_v24 }
 0x3ee   : > { %v1483_v25 = vpop.eup %1482 }
 0x3ef   : > { %v758_v26 = vmul.f32 %v1483_v25, %v1475_v8  ;;  %v982_v33 = vpop.permute.xlu1 %981 }
 0x3f0   : > { %v987_v35 = vsel %vm652_vm3, %v982_v33, 0 }
 0x3f1   : > { %v759_v27 = vpack.c.bf16 %v758_v26, %v758_v26 }
 0x3f3   : > { %v977_v28 = vpop.xlane.xlu0 %976  ;;  %1342 = vmatmul.mubr.msk.bf16.vlgmr.msra.gmra.mrb[12].mxu0 %vm590_vm2, %v759_v27 }
 0x3f4   : > { %1486 = vrcp.f32 %v977_v28  ;;  %1353 = vmatprep.mubr.msk.bf16.mxu0 %vm1685_vm0, %v1684_v0 }
 0x3f6   : > { %v1485_v29 = vpop.eup %1484 }
 0x3f7   : > { %v869_v30 = vmul.f32 %v1485_v29, %v1477_v13  ;;  %v872_v31 = vpop.permute.xlu0 %871 }
 0x3f8   : > { %v877_v32 = vsel %vm652_vm3, %v872_v31, 0 }
 0x3f9   : > { %1352 = vmatpush3.bf16.msra.mxu0 %v877_v32  ;;  %v870_v34 = vpack.c.bf16 %v869_v30, %v869_v30 }
 0x3fa   : > { %1363 = vmatprep.subr.bf16.mxu0 %v1684_v0 }
 0x3fc   : > { %1354 = vmatmul.mubr.msk.bf16.vlgmr.msra.gmra.mrb[16].mxu0 %vm590_vm2, %v870_v34 }
 0x3fd   : > { %1364 = vmatpush3.bf16.msra.mxu0 %v987_v35  ;;  %1365 = vmatprep.mubr.msk.bf16.mxu0 %vm1685_vm0, %v1684_v0 }
 0x3fe   : > { %v1487_v36 = vpop.eup %1486 }
 0x3ff   : > { %v979_v37 = vmul.f32 %v1487_v36, %v1479_v15 }
 0x401   : > { %v980_v38 = vpack.c.bf16 %v979_v37, %v979_v37 }
 0x404   : > { %1366 = vmatmul.mubr.msk.bf16.vlgmr.msra.gmra.mrb[20].mxu0 %vm590_vm2, %v980_v38 }
 0x454   : > { %v690_v39 = vpop.f32.mrb[8].mxu0 }
 0x455   : > { %v1331_v40 = vpop.f32.mrb[9].mxu0 }
 0x456   : > { %v693_v41 = vpop.f32.mrb[10].mxu0 }
 0x457   : > { %v1332_v42 = vpop.f32.mrb[11].mxu0 }
 0x4c6   : > { %v803_v44 = vpop.f32.mrb[12].mxu0 }
 0x4c7   : > { %1030 = vrot.lane.b32.xlu1 %v803_v44, %s1689_s30  ;;  %v1343_v45 = vpop.f32.mrb[13].mxu0  ;;  %s2059_s30 = scalar_lea.hbm %s2137_s20, %s1266_s22 }
 0x4c8   : > { %v806_v46 = vpop.f32.mrb[14].mxu0 }
 0x4c9   : > { %v1344_v47 = vpop.f32.mrb[15].mxu0 }
 0x4cf   : > { %v913_v49 = vpop.f32.mrb[16].mxu0 }
 0x4d0   : > { %1034 = vrot.lane.b32.xlu0 %v913_v49, %s1690_s15  ;;  %v1355_v50 = vpop.f32.mrb[17].mxu0  ;;  %s1606_s15 = sshll.u32 %s1692_s24, 4  ;;  %s1607_s15 = int_to_ptr.vmem [resolvable:$false] %s1606_s15 }
 0x4d1   : > { %v916_v51 = vpop.f32.mrb[18].mxu0  ;;  %p1609_p12 = scmp.lt.s32.totalorder %s2061_s28, %s1607_s15 }
 0x4d2   : > { %v1356_v52 = vpop.f32.mrb[19].mxu0 }
 0x4d7   : > { %v1023_v53 = vpop.f32.mrb[20].mxu0 }
 0x4d8   : > { %1038 = vrot.lane.b32.xlu1 %v1023_v53, %s1691_s17  ;;  %v1367_v0 = vpop.f32.mrb[21].mxu0  ;;  %s1608_s17 = scalar_lea.vmem %s1607_s15, 256 }
 0x4d9   : > { %v1026_v54 = vpop.f32.mrb[22].mxu0  ;;  %p1610_p1 = scmp.lt.s32.totalorder %s1608_s17, %s1602_s29 }
 0x4da   : > { %v1368_v55 = vpop.f32.mrb[23].mxu0 }
 0x4db   : > { %p1611_p2 = por %p1610_p1, %p1609_p12 }
 0x4dd   : > { %p1612_p4 = pnand %p1611_p2, %p1605_p7 }
 0x539   : > { %v1031_v56 = vpop.permute.xlu1 %1030 }
 0x53a   : > { %v1041_v58 = vsel %vm590_vm2, %v690_v39, %v1031_v56 }
 0x542   : > { %v1035_v57 = vpop.permute.xlu0 %1034 }
 0x543   : > { %v1043_v59 = vsel %vm1042_vm4, %v1041_v58, %v1035_v57 }
 0x54a   : > { %v1039_v60 = vpop.permute.xlu1 %1038 }
 0x54b   : > { %v1045_v61 = vsel %vm1044_vm5, %v1043_v59, %v1039_v60 }
 0x54c   : > { %v1046_v62 = vpack.c.bf16 %v1045_v61, %v1045_v61 }
 0x54e   : > { %1374 = vmatmul.mubr.msk.bf16.vlgmr.msra.gmra.mrb[20].mxu1 %vm417_vm1, %v1046_v62 }
 0x621   : > { %v1107_v1 = vpop.f32.mrb[20].mxu1 }
 0x622   : > { %v1108_v2 = vadd.f32 %v1261_v63, %v1107_v1  ;;  %v1375_v3 = vpop.f32.mrb[21].mxu1 }
 0x623   : > { %v1110_v4 = vpop.f32.mrb[22].mxu1 }
 0x624   : > { %v1376_v5 = vpop.f32.mrb[23].mxu1  ;;  %1113 = vst.msk [vmem:[%s391_s25] sm:$0xff] %vm417_vm1, %v1108_v2 }
 0x625   : > { %1615 = shalt.err (!%p1612_p4)
}
 0x626   : > { %s1616_s9 = scalar_lea.hbm %s2059_s30, 128  ;;  %s1620_s19 = scalar_lea.hbm %s2137_s20, 256 }
 0x627   : > { %p1617_p0 = scmp.ne.s32.totalorder %s2059_s30, %s1616_s9  ;;  %p1621_p11 = scmp.lt.u32.totalorder %s2059_s30, %s2137_s20 }
 0x628   : > { %p1622_p13 = scmp.lt.u32.totalorder %s1620_s19, %s1616_s9  ;;  %p1624_p10 = scmp.lt.u32.totalorder %s1616_s9, %s2059_s30 }
 0x629   : > { %p1618_p9 = pnand %p1617_p0, %p1897_p5 }
 0x62a   : > { %p1623_p6 = por %p1622_p13, %p1621_p11 }
 0x62b   : > { %p1619_p8 = pneg %p1618_p9 }
 0x62c   : > { %p1625_p3 = por %p1624_p10, %p1623_p6 }
 0x62e   : > { %p1626_p7 = pnand %p1625_p3, %p1619_p8 }
 0x630   : > { %1629 = shalt.err (!%p1626_p7)
}
 0x631   : > { %1391 = dma.vmem_to_hbm [thread:$0]  (%p1897_p5), %s2061_s28, 128, %s2059_s30, %s1115_s13  }
 0x632 PF: > { %s2138_s26 = sld [smem:[#allocation15_spill]]  ;;  %s2139_s21 = sld [smem:[#allocation16_spill]] }
 0x633   : > { %p2141_p1 = scmp.ge.s32.totalorder %s1676_s12, 2 }
 0x638   : > { %s1140_s29 = sand.u32 1, %s2138_s26   ;;  %p2140_p12 = scmp.ne.s32.totalorder %s2139_s21, 0 }
 0x639   : > { %s1141_s24 = scalar_lea.sflag [#allocation4], %s1140_s29 }
 0x63a   : > { %p1408_p2 = pnand %p2141_p1, %p2140_p12 }
 0x63c   : > { %1659 = dma.done.wait (!%p1408_p2), %s1141_s24, 128  }
 0x63d   : > { %1661 = vsyncadd (!%p1408_p2), %s1141_s24, 4294967168  ;;  %p24_p4 = scmp.ge.s32.totalorder %s1883_s14, 4   ;;  %s2142_s30 = smov %s1668_s10 }
 0x63e   : > { %s2143_s10 = smov %s1672_s11  ;;  %s2144_s11 = smov %s1893_s16 }
 0x63f   : > { %s2145_s12 = smov %s1883_s14  ;;  %26 = sbr.rel (!%p24_p4) target bundleno = 9 (0x9), region = 113 }
 0x646   :  { %1146 = vsyncpa [#allocation3], 1 }
 0x647   :  { %1148 = vsyncpa [#allocation3 + $0x1], 1 }
 0x648   :  { %1149 = vsyncpa [#allocation6], 1 }
 0x649   :  { %1150 = vsyncpa [#allocation9], 1 }
 0x64a   :  { %1151 = vsyncpa [#allocation4], 1 }
 0x64b   :  { %1153 = vsyncpa [#allocation4 + $0x1], 1 }

</bundles_post_ra>
